<compile_context>
chip_gen: v5e
topology: v5e:2x2
jax: 0.10.0
libtpu: 0.0.40
codegen_flags: <defaults>
</compile_context>

<pallas_src>
import functools

import jax
import jax.numpy as jnp
from jax.experimental import pallas as pl
from jax.experimental.pallas import tpu as pltpu

LANE = 128          # pad the output feature dim to this for unmasked (lane-dense) stores
BATCH_TILE = 512    # rows per grid step when the batch is tiled


def mlp_kernel(x_ref, w1_ref, b1_ref, w2_ref, b2_ref, o_ref):
    # Two MXU matmuls + bias add + ReLU, fully resident in VMEM.
    x = x_ref[...]                                                     # [tb, D_in]
    h = jnp.dot(x, w1_ref[...], preferred_element_type=jnp.float32)    # [tb, H]
    h = jnp.maximum(h + b1_ref[...], 0.0)                              # bias + ReLU
    out = jnp.dot(h, w2_ref[...], preferred_element_type=jnp.float32)  # [tb, O_pad]
    o_ref[...] = (out + b2_ref[...]).astype(o_ref.dtype)


def pad_output_params(w2, b2, lane=LANE):
    """One-time zero-pad of the second linear layer to a lane-dense output width."""
    out_dim = w2.shape[1]
    pad = (-out_dim) % lane
    w2p = jnp.pad(w2, ((0, 0), (0, pad)))
    b2p = jnp.pad(b2, ((0, 0), (0, pad)))
    return w2p, b2p


@functools.partial(jax.jit, static_argnames=("out_dim", "batch_tile"))
def tiny_cyber_model(x, w1, b1, w2p, b2p, *, out_dim, batch_tile=BATCH_TILE):
    """Forward pass. w2p/b2p must already be lane-padded via pad_output_params()."""
    B, D_in = x.shape
    H = w1.shape[1]
    O_pad = w2p.shape[1]

    if B <= batch_tile:
        # Single block, no grid: every operand is one full-extent VMEM block.
        out = pl.pallas_call(
            mlp_kernel,
            out_shape=jax.ShapeDtypeStruct((B, O_pad), jnp.float32),
            in_specs=[pl.BlockSpec(memory_space=pltpu.MemorySpace.VMEM)] * 5,
            out_specs=pl.BlockSpec(memory_space=pltpu.MemorySpace.VMEM),
        )(x, w1, b1, w2p, b2p)
    else:
        # Tile the batch axis only; weights/biases use constant index_maps so they
        # stay VMEM-resident across steps. K=512 per step -> no accumulator needed.
        pad_rows = (-B) % batch_tile
        xp = jnp.pad(x, ((0, pad_rows), (0, 0))) if pad_rows else x
        Bp = B + pad_rows
        out = pl.pallas_call(
            mlp_kernel,
            out_shape=jax.ShapeDtypeStruct((Bp, O_pad), jnp.float32),
            grid=(Bp // batch_tile,),
            in_specs=[
                pl.BlockSpec((batch_tile, D_in), lambda i: (i, 0)),
                pl.BlockSpec((D_in, H), lambda i: (0, 0)),
                pl.BlockSpec((1, H), lambda i: (0, 0)),
                pl.BlockSpec((H, O_pad), lambda i: (0, 0)),
                pl.BlockSpec((1, O_pad), lambda i: (0, 0)),
            ],
            out_specs=pl.BlockSpec((batch_tile, O_pad), lambda i: (i, 0)),
            compiler_params=pltpu.CompilerParams(
                dimension_semantics=("parallel",),
            ),
        )(xp, w1, b1, w2p, b2p)
        out = out[:B]

    # Drop the zero-padded output columns outside the kernel.
    return out[:, :out_dim]


if __name__ == "__main__":
    input_dim, hidden_dim, output_dim = 512, 64, 3
    batch_small = 8
    batch_tiled = 1153  # exercises the tiled ("parallel" batch grid) path incl. row padding

    key = jax.random.PRNGKey(0)
    kx, kw1, kb1, kw2, kb2, kxl = jax.random.split(key, 6)

    # Deterministic synthetic parameters (nn.Linear shapes, stored as [in, out]).
    w1 = jax.random.normal(kw1, (input_dim, hidden_dim), dtype=jnp.float32) * 0.05
    b1 = jax.random.normal(kb1, (1, hidden_dim), dtype=jnp.float32) * 0.05
    w2 = jax.random.normal(kw2, (hidden_dim, output_dim), dtype=jnp.float32) * 0.05
    b2 = jax.random.normal(kb2, (1, output_dim), dtype=jnp.float32) * 0.05
    w2p, b2p = pad_output_params(w2, b2)  # one-time lane-dense padding

    def ref_fn(xv):
        return jnp.maximum(xv @ w1 + b1, 0.0) @ w2 + b2

    # Small-batch (no-grid, single VMEM block) path.
    x = jax.random.normal(kx, (batch_small, input_dim), dtype=jnp.float32)
    out = tiny_cyber_model(x, w1, b1, w2p, b2p, out_dim=output_dim)
    jax.block_until_ready(out)
    assert out.shape == (batch_small, output_dim)
    assert jnp.allclose(out, ref_fn(x), atol=1e-4, rtol=1e-4)

    # Tiled-batch path (batch axis "parallel", weights resident across grid steps).
    xl = jax.random.normal(kxl, (batch_tiled, input_dim), dtype=jnp.float32)
    out_l = tiny_cyber_model(xl, w1, b1, w2p, b2p, out_dim=output_dim, batch_tile=512)
    jax.block_until_ready(out_l)
    assert out_l.shape == (batch_tiled, output_dim)
    assert jnp.allclose(out_l, ref_fn(xl), atol=1e-4, rtol=1e-4)

    print("KERNEL_OK")
</pallas_src>

<mosaic_0001>
module attributes {stable_mosaic.version = 11 : i64} {
  func.func @mlp_kernel(%arg0: memref<8x512xf32, #tpu.memory_space<vmem>>, %arg1: memref<512x64xf32, #tpu.memory_space<vmem>>, %arg2: memref<1x64xf32, #tpu.memory_space<vmem>>, %arg3: memref<64x128xf32, #tpu.memory_space<vmem>>, %arg4: memref<1x128xf32, #tpu.memory_space<vmem>>, %arg5: memref<8x128xf32, #tpu.memory_space<vmem>>) attributes {dimension_semantics = [], scalar_prefetch = 0 : i64, scratch_operands = 0 : i64, tpu.core_type = #tpu.core_type<tc>} {
    %c0 = arith.constant 0 : index
    %c0_0 = arith.constant 0 : index
    %0 = vector.load %arg0[%c0, %c0_0] : memref<8x512xf32, #tpu.memory_space<vmem>>, vector<8x512xf32>
    %c0_1 = arith.constant 0 : index
    %c0_2 = arith.constant 0 : index
    %1 = vector.load %arg1[%c0_1, %c0_2] : memref<512x64xf32, #tpu.memory_space<vmem>>, vector<512x64xf32>
    %cst = arith.constant dense<0.000000e+00> : vector<8x64xf32>
    %2 = tpu.matmul %0, %1, %cst {dimension_numbers = #tpu.dot_dimension_numbers<[1], [0], [0], [1], [0, 0, 1, 1], [], []>} : vector<8x512xf32>, vector<512x64xf32>, vector<8x64xf32> -> vector<8x64xf32>
    %c0_3 = arith.constant 0 : index
    %c0_4 = arith.constant 0 : index
    %3 = vector.load %arg2[%c0_3, %c0_4] : memref<1x64xf32, #tpu.memory_space<vmem>>, vector<1x64xf32>
    %4 = vector.broadcast %3 : vector<1x64xf32> to vector<8x64xf32>
    %5 = arith.addf %2, %4 : vector<8x64xf32>
    %cst_5 = arith.constant 0.000000e+00 : f32
    %6 = vector.broadcast %cst_5 : f32 to vector<8x64xf32>
    %7 = arith.maximumf %5, %6 : vector<8x64xf32>
    %c0_6 = arith.constant 0 : index
    %c0_7 = arith.constant 0 : index
    %8 = vector.load %arg3[%c0_6, %c0_7] : memref<64x128xf32, #tpu.memory_space<vmem>>, vector<64x128xf32>
    %cst_8 = arith.constant dense<0.000000e+00> : vector<8x128xf32>
    %9 = tpu.matmul %7, %8, %cst_8 {dimension_numbers = #tpu.dot_dimension_numbers<[1], [0], [0], [1], [0, 0, 1, 1], [], []>} : vector<8x64xf32>, vector<64x128xf32>, vector<8x128xf32> -> vector<8x128xf32>
    %c0_9 = arith.constant 0 : index
    %c0_10 = arith.constant 0 : index
    %10 = vector.load %arg4[%c0_9, %c0_10] : memref<1x128xf32, #tpu.memory_space<vmem>>, vector<1x128xf32>
    %11 = vector.broadcast %10 : vector<1x128xf32> to vector<8x128xf32>
    %12 = arith.addf %9, %11 : vector<8x128xf32>
    %c0_11 = arith.constant 0 : index
    %c0_12 = arith.constant 0 : index
    %13 = vector.load %arg5[%c0_11, %c0_12] : memref<8x128xf32, #tpu.memory_space<vmem>>, vector<8x128xf32>
    tpu.vector_store %arg5[%c0_11, %c0_12], %12 {strides = array<i32>} : memref<8x128xf32, #tpu.memory_space<vmem>>, vector<8x128xf32>,
    return
  }
}

</mosaic_0001>

<bundles_post_ra>
// kernel: tiny_cyber_model.1
= control target key start
LH: loop header
LB: loop body
LE: loop exit
PB: predicated region body
PF: predicated region fallthrough
CT: control target
= control target key end

     0   :  { %vm185_vm0 = vcmask 523264   ;;  %s484_s1 = inlined_call_operand.vmem [shape: f32[512,64], index: 1, kind: input, shape index: {}]   ;;  %s485_s2 = inlined_call_operand.vmem [shape: f32[1,64], index: 2, kind: input, shape index: {}]   ;;  %s486_s0 = inlined_call_operand.vmem [shape: f32[8,512], index: 0, kind: input, shape index: {}]   ;;  %s487_s3 = inlined_call_operand.vmem [shape: f32[64,128], index: 3, kind: input, shape index: {}]   ;;  %s488_s4 = inlined_call_operand.vmem [shape: f32[1,128], index: 4, kind: input, shape index: {}]   ;;  %s489_s5 = inlined_call_operand.vmem [shape: f32[8,128], index: 5, kind: output, shape index: {}]  }
   0x1   :  { %v71_v0 = vld [vmem:[%s484_s1 + $0x178] sm:$0xff]  ;;  %v70_v2 = vld [vmem:[%s484_s1 + $0x170] sm:$0xff]  ;;  %v69_v6 = vld [vmem:[%s484_s1 + $0x168] sm:$0xff] }
   0x2   :  { %v39_v1 = vld [vmem:[%s484_s1 + $0x78] sm:$0xff]  ;;  %132 = vmatpush.msra.mxu2 %v71_v0  ;;  %v38_v4 = vld [vmem:[%s484_s1 + $0x70] sm:$0xff]  ;;  %v37_v8 = vld [vmem:[%s484_s1 + $0x68] sm:$0xff] }
   0x3   :  { %92 = vmatpush.msra.mxu0 %v39_v1  ;;  %v87_v3 = vld [vmem:[%s484_s1 + $0x1f8] sm:$0xff]  ;;  %v86_v7 = vld [vmem:[%s484_s1 + $0x1f0] sm:$0xff]  ;;  %v85_v10 = vld [vmem:[%s484_s1 + $0x1e8] sm:$0xff] }
   0x4   :  { %v55_v5 = vld [vmem:[%s484_s1 + $0xf8] sm:$0xff]  ;;  %152 = vmatpush.msra.mxu3 %v87_v3  ;;  %133 = vmatpush.msra.mxu2 %v70_v2  ;;  %v54_v9 = vld [vmem:[%s484_s1 + $0xf0] sm:$0xff]  ;;  %v68_v11 = vld [vmem:[%s484_s1 + $0x160] sm:$0xff] }
   0x5   :  { %112 = vmatpush.msra.mxu1 %v55_v5  ;;  %93 = vmatpush.msra.mxu0 %v38_v4  ;;  %v36_v12 = vld [vmem:[%s484_s1 + $0x60] sm:$0xff]  ;;  %v53_v13 = vld [vmem:[%s484_s1 + $0xe8] sm:$0xff]  ;;  %v67_v16 = vld [vmem:[%s484_s1 + $0x158] sm:$0xff] }
   0x6   :  { %153 = vmatpush.msra.mxu3 %v86_v7  ;;  %134 = vmatpush.msra.mxu2 %v69_v6  ;;  %v84_v14 = vld [vmem:[%s484_s1 + $0x1e0] sm:$0xff]  ;;  %v35_v17 = vld [vmem:[%s484_s1 + $0x58] sm:$0xff]  ;;  %v66_v20 = vld [vmem:[%s484_s1 + $0x150] sm:$0xff] }
   0x7   :  { %113 = vmatpush.msra.mxu1 %v54_v9  ;;  %94 = vmatpush.msra.mxu0 %v37_v8  ;;  %v52_v15 = vld [vmem:[%s484_s1 + $0xe0] sm:$0xff]  ;;  %v83_v18 = vld [vmem:[%s484_s1 + $0x1d8] sm:$0xff]  ;;  %v34_v21 = vld [vmem:[%s484_s1 + $0x50] sm:$0xff] }
   0x8   :  { %154 = vmatpush.msra.mxu3 %v85_v10  ;;  %135 = vmatpush.msra.mxu2 %v68_v11  ;;  %v51_v19 = vld [vmem:[%s484_s1 + $0xd8] sm:$0xff]  ;;  %v82_v22 = vld [vmem:[%s484_s1 + $0x1d0] sm:$0xff]  ;;  %v65_v24 = vld [vmem:[%s484_s1 + $0x148] sm:$0xff] }
   0x9   :  { %114 = vmatpush.msra.mxu1 %v53_v13  ;;  %95 = vmatpush.msra.mxu0 %v36_v12  ;;  %v50_v23 = vld [vmem:[%s484_s1 + $0xd0] sm:$0xff]  ;;  %v33_v25 = vld [vmem:[%s484_s1 + $0x48] sm:$0xff]  ;;  %v64_v28 = vld [vmem:[%s484_s1 + $0x140] sm:$0xff] }
   0xa   :  { %155 = vmatpush.msra.mxu3 %v84_v14  ;;  %136 = vmatpush.msra.mxu2 %v67_v16  ;;  %v81_v26 = vld [vmem:[%s484_s1 + $0x1c8] sm:$0xff]  ;;  %v32_v29 = vld [vmem:[%s484_s1 + $0x40] sm:$0xff]  ;;  %v63_v32 = vld [vmem:[%s484_s1 + $0x138] sm:$0xff] }
   0xb   :  { %115 = vmatpush.msra.mxu1 %v52_v15  ;;  %96 = vmatpush.msra.mxu0 %v35_v17  ;;  %v49_v27 = vld [vmem:[%s484_s1 + $0xc8] sm:$0xff]  ;;  %v80_v30 = vld [vmem:[%s484_s1 + $0x1c0] sm:$0xff]  ;;  %v31_v33 = vld [vmem:[%s484_s1 + $0x38] sm:$0xff] }
   0xc   :  { %156 = vmatpush.msra.mxu3 %v83_v18  ;;  %137 = vmatpush.msra.mxu2 %v66_v20  ;;  %v48_v31 = vld [vmem:[%s484_s1 + $0xc0] sm:$0xff]  ;;  %v79_v34 = vld [vmem:[%s484_s1 + $0x1b8] sm:$0xff]  ;;  %v62_v36 = vld [vmem:[%s484_s1 + $0x130] sm:$0xff] }
   0xd   :  { %116 = vmatpush.msra.mxu1 %v51_v19  ;;  %97 = vmatpush.msra.mxu0 %v34_v21  ;;  %v47_v35 = vld [vmem:[%s484_s1 + $0xb8] sm:$0xff]  ;;  %v30_v37 = vld [vmem:[%s484_s1 + $0x30] sm:$0xff]  ;;  %v61_v40 = vld [vmem:[%s484_s1 + $0x128] sm:$0xff] }
   0xe   :  { %157 = vmatpush.msra.mxu3 %v82_v22  ;;  %138 = vmatpush.msra.mxu2 %v65_v24  ;;  %v78_v38 = vld [vmem:[%s484_s1 + $0x1b0] sm:$0xff]  ;;  %v29_v41 = vld [vmem:[%s484_s1 + $0x28] sm:$0xff]  ;;  %v60_v44 = vld [vmem:[%s484_s1 + $0x120] sm:$0xff] }
   0xf   :  { %117 = vmatpush.msra.mxu1 %v50_v23  ;;  %98 = vmatpush.msra.mxu0 %v33_v25  ;;  %v46_v39 = vld [vmem:[%s484_s1 + $0xb0] sm:$0xff]  ;;  %v77_v42 = vld [vmem:[%s484_s1 + $0x1a8] sm:$0xff]  ;;  %v28_v45 = vld [vmem:[%s484_s1 + $0x20] sm:$0xff] }
  0x10   :  { %158 = vmatpush.msra.mxu3 %v81_v26  ;;  %139 = vmatpush.msra.mxu2 %v64_v28  ;;  %v45_v43 = vld [vmem:[%s484_s1 + $0xa8] sm:$0xff]  ;;  %v76_v46 = vld [vmem:[%s484_s1 + $0x1a0] sm:$0xff]  ;;  %v59_v48 = vld [vmem:[%s484_s1 + $0x118] sm:$0xff] }
  0x11   :  { %118 = vmatpush.msra.mxu1 %v49_v27  ;;  %99 = vmatpush.msra.mxu0 %v32_v29  ;;  %v44_v47 = vld [vmem:[%s484_s1 + $0xa0] sm:$0xff]  ;;  %v27_v49 = vld [vmem:[%s484_s1 + $0x18] sm:$0xff]  ;;  %v58_v52 = vld [vmem:[%s484_s1 + $0x110] sm:$0xff] }
  0x12   :  { %159 = vmatpush.msra.mxu3 %v80_v30  ;;  %140 = vmatpush.msra.mxu2 %v63_v32  ;;  %v75_v50 = vld [vmem:[%s484_s1 + $0x198] sm:$0xff]  ;;  %v26_v53 = vld [vmem:[%s484_s1 + $0x10] sm:$0xff]  ;;  %v57_v56 = vld [vmem:[%s484_s1 + $0x108] sm:$0xff] }
  0x13   :  { %119 = vmatpush.msra.mxu1 %v48_v31  ;;  %100 = vmatpush.msra.mxu0 %v31_v33  ;;  %v43_v51 = vld [vmem:[%s484_s1 + $0x98] sm:$0xff]  ;;  %v74_v54 = vld [vmem:[%s484_s1 + $0x190] sm:$0xff]  ;;  %v25_v57 = vld [vmem:[%s484_s1 + $0x8] sm:$0xff] }
  0x14   :  { %160 = vmatpush.msra.mxu3 %v79_v34  ;;  %141 = vmatpush.msra.mxu2 %v62_v36  ;;  %v42_v55 = vld [vmem:[%s484_s1 + $0x90] sm:$0xff]  ;;  %v73_v58 = vld [vmem:[%s484_s1 + $0x188] sm:$0xff]  ;;  %v56_v60 = vld [vmem:[%s484_s1 + $0x100] sm:$0xff] }
  0x15   :  { %120 = vmatpush.msra.mxu1 %v47_v35  ;;  %101 = vmatpush.msra.mxu0 %v30_v37  ;;  %v41_v59 = vld [vmem:[%s484_s1 + $0x88] sm:$0xff]  ;;  %v24_v61 = vld [vmem:[%s484_s1] sm:$0xff]  ;;  %v22_v62 = vld [vmem:[%s486_s0 + $0x10] sm:$0xff] }
  0x16   :  { %161 = vmatpush.msra.mxu3 %v78_v38  ;;  %142 = vmatpush.msra.mxu2 %v61_v40  ;;  %v72_v63 = vld [vmem:[%s484_s1 + $0x180] sm:$0xff]  ;;  %v23_v1 = vld [vmem:[%s486_s0 + $0x18] sm:$0xff]  ;;  %v21_v4 = vld [vmem:[%s486_s0 + $0x8] sm:$0xff] }
  0x17   :  { %121 = vmatpush.msra.mxu1 %v46_v39  ;;  %102 = vmatpush.msra.mxu0 %v29_v41  ;;  %v20_v0 = vld [vmem:[%s486_s0] sm:$0xff]  ;;  %v180_v3 = vld [vmem:[%s487_s3 + $0x38] sm:$0xff]  ;;  %v179_v5 = vld [vmem:[%s487_s3 + $0x30] sm:$0xff] }
  0x18   :  { %162 = vmatpush.msra.mxu3 %v77_v42  ;;  %143 = vmatpush.msra.mxu2 %v60_v44  ;;  %v40_v2 = vld [vmem:[%s484_s1 + $0x80] sm:$0xff]  ;;  %v178_v6 = vld [vmem:[%s487_s3 + $0x28] sm:$0xff]  ;;  %v176_v8 = vld [vmem:[%s487_s3 + $0x18] sm:$0xff] }
  0x19   :  { %122 = vmatpush.msra.mxu1 %v45_v43  ;;  %103 = vmatpush.msra.mxu0 %v28_v45  ;;  %v177_v7 = vld [vmem:[%s487_s3 + $0x20] sm:$0xff]  ;;  %v175_v9 = vld [vmem:[%s487_s3 + $0x10] sm:$0xff]  ;;  %v174_v10 = vld [vmem:[%s487_s3 + $0x8] sm:$0xff] }
  0x1a   :  { %163 = vmatpush.msra.mxu3 %v76_v46  ;;  %144 = vmatpush.msra.mxu2 %v59_v48  ;;  %v173_v11 = vld [vmem:[%s487_s3] sm:$0xff] }
  0x1b   :  { %123 = vmatpush.msra.mxu1 %v44_v47  ;;  %104 = vmatpush.msra.mxu0 %v27_v49  ;;  %v215_v12 = vld [vmem:[%s485_s2] ss:$0 sm:$0xff] }
  0x1c   :  { %164 = vmatpush.msra.mxu3 %v75_v50  ;;  %145 = vmatpush.msra.mxu2 %v58_v52  ;;  %v216_v22 = vld [vmem:[%s488_s4] ss:$0 sm:$0xff] }
  0x1d   :  { %124 = vmatpush.msra.mxu1 %v43_v51  ;;  %105 = vmatpush.msra.mxu0 %v26_v53 }
  0x1e   :  { %165 = vmatpush.msra.mxu3 %v74_v54  ;;  %146 = vmatpush.msra.mxu2 %v57_v56 }
  0x1f   :  { %125 = vmatpush.msra.mxu1 %v42_v55  ;;  %106 = vmatpush.msra.mxu0 %v25_v57 }
  0x20   :  { %166 = vmatpush.msra.mxu3 %v73_v58  ;;  %147 = vmatpush.msra.mxu2 %v56_v60 }
  0x21   :  { %126 = vmatpush.msra.mxu1 %v41_v59  ;;  %107 = vmatpush.msra.mxu0 %v24_v61 }
  0x22   :  { %148 = vmatmul.f32.vlgmr.msra.gmra.mxu2 %v22_v62  ;;  %167 = vmatpush.msra.mxu3 %v72_v63 }
  0x23   :  { %108 = vmatmul.f32.vlgmr.msra.gmra.mxu0 %v20_v0  ;;  %168 = vmatmul.f32.vlgmr.msra.gmra.mxu3 %v23_v1 }
  0x24   :  { %127 = vmatpush.msra.mxu1 %v40_v2  ;;  %197 = vmatpush.msrb.mxu0 %v180_v3 }
  0x25   :  { %128 = vmatmul.f32.vlgmr.msra.gmra.mxu1 %v21_v4 }
  0x26   :  { %198 = vmatpush.msrb.mxu0 %v179_v5 }
  0x28   :  { %199 = vmatpush.msrb.mxu0 %v178_v6 }
  0x2a   :  { %200 = vmatpush.msrb.mxu0 %v177_v7 }
  0x2c   :  { %201 = vmatpush.msrb.mxu0 %v176_v8 }
  0x2e   :  { %202 = vmatpush.msrb.mxu0 %v175_v9 }
  0x30   :  { %203 = vmatpush.msrb.mxu0 %v174_v10 }
  0x32   :  { %204 = vmatpush.msrb.mxu0 %v173_v11 }
  0xa0   :  { %v109_v13 = vpop.f32.mrf.mxu0 }
  0xa1   :  { %v110_v14 = vadd.f32 %v215_v12, %v109_v13 }
  0xa2   :  { %v129_v15 = vpop.f32.mrf.mxu1 }
  0xa3   :  { %v130_v16 = vadd.f32 %v129_v15, %v110_v14 }
  0xa5   :  { %v149_v17 = vpop.f32.mrf.mxu2 }
  0xa6   :  { %v150_v18 = vadd.f32 %v149_v17, %v130_v16  ;;  %v169_v19 = vpop.f32.mrf.mxu3 }
  0xa8   :  { %v170_v20 = vadd.f32 %v169_v19, %v150_v18 }
  0xaa   :  { %v172_v21 = vmax.f32 %v170_v20, 0.0 }
  0xac   :  { %214 = vmatmul.msk.f32.vlgmr.msrb.gmra.mxu0 %vm185_vm0, %v172_v21 }
 0x129   :  { %v206_v23 = vpop.f32.mrf.mxu0 }
 0x12a   :  { %v207_v24 = vadd.f32 %v216_v22, %v206_v23 }
 0x12c   :  { %209 = vst [vmem:[%s489_s5] sm:$0xff] %v207_v24 }

</bundles_post_ra>
